<compile_context>
chip_gen: v7x
topology: tpu7x:2x2x1
jax: 0.10.0
libtpu: 0.0.40
codegen_flags: <defaults>
</compile_context>

<pallas_src>
import jax
import jax.numpy as jnp
from jax.experimental import pallas as pl
from jax.experimental.pallas import tpu as pltpu

LANES = 128
ROW_ALIGN = 16            # native bf16 sublane tile is (16, 128); fine for f32 too
MAX_ROW_TILE = 8192       # (8192,128) f32 = 4 MiB/input/step; 16 MiB double-buffered
MIN_KERNEL_ROWS = 16      # below this a kernel launch is not worth it
VMEM_LIMIT_BYTES = 32 << 20   # raises v5e's 16 MiB default; <= physical on all gens


def _make_mse_block_kernel(out_rows):
    """Per grid step: fold the squared differences of a (row_tile, 128) tile
    into an (out_rows, 128) block of partial sums. Pure VPU work (sub, mul,
    adds), no cross-lane XLU reduce, no mask."""

    def kernel(p_ref, t_ref, o_ref):
        d = p_ref[...].astype(jnp.float32) - t_ref[...].astype(jnp.float32)
        sq = d * d
        # out_rows >= 16 -> several independent accumulator chains for ILP.
        o_ref[...] = sq.reshape(-1, out_rows, LANES).sum(axis=0)

    return kernel


def _choose_row_tile(rows_full):
    """Pick a tile height (multiple of ROW_ALIGN, <= MAX_ROW_TILE) that
    (a) amortizes per-step pipeline overhead with multi-MiB tiles,
    (b) yields >= 2 grid steps when possible (v7x dual-TC load balance), and
    (c) leaves only a tiny ragged remainder for the jnp tail."""
    nblk = max(1, pl.cdiv(rows_full, MAX_ROW_TILE))
    if nblk == 1 and rows_full >= 2 * ROW_ALIGN:
        nblk = 2
    row_tile = pl.cdiv(rows_full, nblk)
    row_tile = max(ROW_ALIGN, (row_tile // ROW_ALIGN) * ROW_ALIGN)
    return min(row_tile, MAX_ROW_TILE)


def l2_loss(preds, targets):
    assert preds.shape == targets.shape
    n_elem = preds.size

    p_flat = preds.reshape(-1)     # free reshape; cast to f32 happens in-kernel
    t_flat = targets.reshape(-1)

    rows_full = n_elem // LANES

    if rows_full < MIN_KERNEL_ROWS:
        # Tiny input: plain jnp.
        d = p_flat.astype(jnp.float32) - t_flat.astype(jnp.float32)
        return jnp.sum(d * d) / jnp.float32(n_elem)

    row_tile = _choose_row_tile(rows_full)
    num_blocks = rows_full // row_tile       # full tiles only -> no in-kernel mask
    rows_main = num_blocks * row_tile
    n_main = rows_main * LANES

    # Ragged remainder (< one tile of rows, plus <128 lane leftover): plain jnp.
    tail_sum = jnp.float32(0.0)
    if n_main < n_elem:
        dt = p_flat[n_main:].astype(jnp.float32) - t_flat[n_main:].astype(jnp.float32)
        tail_sum = jnp.sum(dt * dt)

    # Lane-dense 2-D views of the bulk data. When n_elem % 128 == 0 (the common
    # case, and the demo) these are free bitcast reshapes: no extra HBM pass.
    n_rows128 = rows_full * LANES
    if n_rows128 == n_elem:
        p2d = p_flat.reshape(rows_full, LANES)
        t2d = t_flat.reshape(rows_full, LANES)
    else:
        # Prefix slice materializes one extra copy only when n_elem % 128 != 0.
        p2d = p_flat[:n_rows128].reshape(rows_full, LANES)
        t2d = t_flat[:n_rows128].reshape(rows_full, LANES)

    out_rows = 32 if row_tile % 32 == 0 else ROW_ALIGN
    itemsize = jnp.dtype(preds.dtype).itemsize

    partials = pl.pallas_call(
        _make_mse_block_kernel(out_rows),
        out_shape=jax.ShapeDtypeStruct((num_blocks * out_rows, LANES), jnp.float32),
        grid=(num_blocks,),
        in_specs=[
            pl.BlockSpec((row_tile, LANES), lambda i: (i, 0)),
            pl.BlockSpec((row_tile, LANES), lambda i: (i, 0)),
        ],
        out_specs=pl.BlockSpec((out_rows, LANES), lambda i: (i, 0)),
        compiler_params=pltpu.CompilerParams(
            dimension_semantics=("parallel",),   # shards across TCs on v7x
            vmem_limit_bytes=VMEM_LIMIT_BYTES,
        ),
        cost_estimate=pl.CostEstimate(
            flops=3 * n_main,
            transcendentals=0,
            bytes_accessed=2 * n_main * itemsize + num_blocks * out_rows * LANES * 4,
        ),
    )(p2d, t2d)

    # Tiny final cross-lane reduce + divide-by-N in the wrapper.
    total = jnp.sum(partials) + tail_sum
    return total / jnp.float32(n_elem)


if __name__ == "__main__":
    key = jax.random.PRNGKey(0)
    k1, k2 = jax.random.split(key)
    # NCHW, matching the PyTorch module's expected inputs.
    preds = jax.random.normal(k1, (2, 4, 16, 16), dtype=jnp.float32)
    targets = jax.random.normal(k2, (2, 4, 16, 16), dtype=jnp.float32)

    loss = l2_loss(preds, targets)
    jax.block_until_ready(loss)

    ref = jnp.mean(jnp.square(preds - targets))
    assert jnp.allclose(loss, ref, rtol=1e-5, atol=1e-6), (loss, ref)
    print("KERNEL_OK")
</pallas_src>

<mosaic_0001>
module attributes {stable_mosaic.version = 11 : i64} {
  func.func @kernel(%arg0: i32, %arg1: memref<16x128xf32, #tpu.memory_space<vmem>>, %arg2: memref<16x128xf32, #tpu.memory_space<vmem>>, %arg3: memref<16x128xf32, #tpu.memory_space<vmem>>) attributes {dimension_semantics = [#tpu.dimension_semantics<parallel>], iteration_bounds = array<i64: 1>, scalar_prefetch = 0 : i64, scratch_operands = 0 : i64, tpu.core_type = #tpu.core_type<tc>, window_params = [{transform_indices = @transform_0, window_bounds = array<i64: 16, 128>}, {transform_indices = @transform_1, window_bounds = array<i64: 16, 128>}, {transform_indices = @transform_2, window_bounds = array<i64: 16, 128>}]} {
    %c0 = arith.constant 0 : index
    %c0_0 = arith.constant 0 : index
    %0 = vector.load %arg1[%c0, %c0_0] : memref<16x128xf32, #tpu.memory_space<vmem>>, vector<16x128xf32>
    %c0_1 = arith.constant 0 : index
    %c0_2 = arith.constant 0 : index
    %1 = vector.load %arg2[%c0_1, %c0_2] : memref<16x128xf32, #tpu.memory_space<vmem>>, vector<16x128xf32>
    %2 = arith.subf %0, %1 : vector<16x128xf32>
    %3 = arith.mulf %2, %2 : vector<16x128xf32>
    %4 = vector.shape_cast %3 : vector<16x128xf32> to vector<1x16x128xf32>
    %cst = arith.constant dense<0.000000e+00> : vector<16x128xf32>
    %5 = vector.multi_reduction <add>, %4, %cst [0] : vector<1x16x128xf32> to vector<16x128xf32>
    %c0_3 = arith.constant 0 : index
    %c0_4 = arith.constant 0 : index
    %6 = vector.load %arg3[%c0_3, %c0_4] : memref<16x128xf32, #tpu.memory_space<vmem>>, vector<16x128xf32>
    tpu.vector_store %arg3[%c0_3, %c0_4], %5 {strides = array<i32>} : memref<16x128xf32, #tpu.memory_space<vmem>>, vector<16x128xf32>,
    return
  }
  func.func @transform_0(%arg0: i32) -> (i32, i32) {
    %c0_i32 = arith.constant 0 : i32
    %c0_i32_0 = arith.constant 0 : i32
    return %arg0, %c0_i32 : i32, i32
  }
  func.func @transform_1(%arg0: i32) -> (i32, i32) {
    %c0_i32 = arith.constant 0 : i32
    %c0_i32_0 = arith.constant 0 : i32
    return %arg0, %c0_i32 : i32, i32
  }
  func.func @transform_2(%arg0: i32) -> (i32, i32) {
    %c0_i32 = arith.constant 0 : i32
    %c0_i32_0 = arith.constant 0 : i32
    return %arg0, %c0_i32 : i32, i32
  }
}

</mosaic_0001>

<bundles_post_ra>
// kernel: tpu_custom_call.1
= control target key start
LH: loop header
LB: loop body
LE: loop exit
PB: predicated region body
PF: predicated region fallthrough
CT: control target
= control target key end

     0   :  { %7 = vsyncpa [#allocation3], 0  ;;  %s212_s0 = inlined_call_operand.hbm [shape: f32[16,128], index: 0, kind: input, shape index: {}]   ;;  %s213_s1 = inlined_call_operand.hbm [shape: f32[16,128], index: 1, kind: input, shape index: {}]   ;;  %s214_s2 = inlined_call_operand.hbm [shape: f32[16,128], index: 2, kind: output, shape index: {}]  }
   0x1   :  { %8 = vsyncpa [#allocation6], 0 }
   0x2   :  { %9 = vsyncpa [#allocation4], 0  ;;  %s147_s9 = smov [#allocation2]   ;;  %s75_s13 = scalar_lea.hbm %s212_s0, 256 }
   0x3   :  { %s15_s10 = sshll.u32 %s147_s9, 4  ;;  %p76_p0 = scmp.ne.s32.totalorder %s212_s0, %s75_s13  ;;  %s16_s10 = int_to_ptr.vmem [resolvable:$true] %s15_s10 }
   0x4   :  { %p79_p1 = scmp.lt.u32.totalorder %s75_s13, %s212_s0 }
   0x6   :  { %p81_p2 = pnand %p79_p1, %p76_p0 }
   0x8   :  { %84 = shalt.err (!%p81_p2)
}
   0x9   :  { %s85_s18 = scalar_lea.vmem %s16_s10, 256  ;;  %p90_p4 = scmp.lt.s32.totalorder %s16_s10, %s16_s10 }
   0xa   :  { %p86_p3 = scmp.ne.s32.totalorder %s16_s10, %s85_s18  ;;  %p91_p5 = scmp.lt.s32.totalorder %s85_s18, %s85_s18 }
   0xc   :  { %p92_p6 = por %p91_p5, %p90_p4 }
   0xe   :  { %p93_p7 = pnand %p92_p6, %p86_p3 }
  0x10   :  { %96 = shalt.err (!%p93_p7)
}
  0x11   :  { %s148_s19 = smov 128   ;;  %s149_s20 = smov 8  }
  0x12   :  { %21 = dma.hbm_to_vmem [thread:$0]  %s212_s0, 256, %s16_s10, [#allocation3], %s148_s19, %s148_s19, %s149_s20  }
  0x13   :  { %s150_s23 = smov [#allocation5]   ;;  %s97_s27 = scalar_lea.hbm %s213_s1, 256 }
  0x14   :  { %s27_s24 = sshll.u32 %s150_s23, 4  ;;  %p98_p8 = scmp.ne.s32.totalorder %s213_s1, %s97_s27  ;;  %s28_s24 = int_to_ptr.vmem [resolvable:$true] %s27_s24 }
  0x15   :  { %p101_p9 = scmp.lt.u32.totalorder %s97_s27, %s213_s1 }
  0x17   :  { %p103_p10 = pnand %p101_p9, %p98_p8 }
  0x19   :  { %106 = shalt.err (!%p103_p10)
}
  0x1a   :  { %s107_s4 = scalar_lea.vmem %s28_s24, 256  ;;  %p112_p12 = scmp.lt.s32.totalorder %s28_s24, %s28_s24 }
  0x1b   :  { %p108_p11 = scmp.ne.s32.totalorder %s28_s24, %s107_s4  ;;  %p113_p13 = scmp.lt.s32.totalorder %s107_s4, %s107_s4 }
  0x1d   :  { %p114_p0 = por %p113_p13, %p112_p12 }
  0x1f   :  { %p115_p1 = pnand %p114_p0, %p108_p11 }
  0x21   :  { %118 = shalt.err (!%p115_p1)
}
  0x22   :  { %33 = dma.hbm_to_vmem [thread:$0]  %s213_s1, 256, %s28_s24, [#allocation6], %s148_s19, %s148_s19, %s149_s20  }
  0x23   :  { %141 = dma.done.wait [#allocation3], 256  }
  0x24   :  { %142 = vsyncadd [#allocation3], 4294967040 }
  0x25   :  { %143 = dma.done.wait [#allocation6], 256  }
  0x26   :  { %144 = vsyncadd [#allocation6], 4294967040  ;;  %v40_v0 = vld [vmem:[#allocation2] sm:$0xff]  ;;  %v42_v1 = vld [vmem:[#allocation5] sm:$0xff]  ;;  %s151_s6 = smov [#allocation7]  }
  0x27   :  { %v41_v2 = vld [vmem:[#allocation2 + $0x8] sm:$0xff]  ;;  %v44_v3 = vsub.f32 %v40_v0, %v42_v1  ;;  %v43_v4 = vld [vmem:[#allocation5 + $0x8] sm:$0xff]  ;;  %s57_s7 = sshll.u32 %s151_s6, 4  ;;  %s58_s7 = int_to_ptr.vmem [resolvable:$true] %s57_s7 }
  0x28   :  { %v45_v5 = vsub.f32 %v41_v2, %v43_v4  ;;  %s119_s8 = scalar_lea.vmem %s58_s7, 256  ;;  %p124_p3 = scmp.lt.s32.totalorder %s58_s7, %s58_s7 }
  0x29   :  { %v46_v6 = vmul.f32 %v44_v3, %v44_v3  ;;  %p120_p2 = scmp.ne.s32.totalorder %s58_s7, %s119_s8  ;;  %p125_p4 = scmp.lt.s32.totalorder %s119_s8, %s119_s8 }
  0x2a   :  { %v47_v7 = vmul.f32 %v45_v5, %v45_v5 }
  0x2b   :  { %50 = vst [vmem:[#allocation7] sm:$0xff] %v46_v6  ;;  %p126_p5 = por %p125_p4, %p124_p3 }
  0x2c   :  { %51 = vst [vmem:[#allocation7 + $0x8] sm:$0xff] %v47_v7 }
  0x2d   :  { %p127_p6 = pnand %p126_p5, %p120_p2 }
  0x2f   :  { %130 = shalt.err (!%p127_p6)
}
  0x30   :  { %s131_s10 = scalar_lea.hbm %s214_s2, 256 }
  0x31   :  { %p132_p7 = scmp.ne.s32.totalorder %s214_s2, %s131_s10  ;;  %p135_p8 = scmp.lt.u32.totalorder %s131_s10, %s214_s2 }
  0x33   :  { %p137_p9 = pnand %p135_p8, %p132_p7 }
  0x35   :  { %140 = shalt.err (!%p137_p9)
}
  0x36   :  { %63 = dma.vmem_to_hbm [thread:$0]  %s58_s7, 256, %s214_s2, [#allocation4], %s148_s19, %s148_s19, %s149_s20  }
  0x37   :  { %145 = dma.done.wait [#allocation4], 256  }
  0x38   :  { %146 = vsyncadd [#allocation4], 4294967040 }
  0x39   :  { %67 = vsyncpa [#allocation3], 1 }
  0x3a   :  { %68 = vsyncpa [#allocation6], 1 }
  0x3b   :  { %69 = vsyncpa [#allocation4], 1 }

</bundles_post_ra>
